<compile_context>
chip_gen: v5e
topology: v5e:2x2
jax: 0.10.0
libtpu: 0.0.40
codegen_flags: <defaults>
</compile_context>

<pallas_src>
import functools
import math

import jax
import jax.numpy as jnp
from jax.experimental import pallas as pl
from jax.experimental.pallas import tpu as pltpu


def _attention_kernel(x_ref, wqkv_ref, wproj_ref, out_ref, ctx_ref, *,
                      heads_per_group, head_dim, n_valid):
    """One (head-group, batch-element) step of fused attention.

    x_ref     : (Np, C)    compute dtype (f32 or bf16); Np = padded sequence length
    wqkv_ref  : (C, 3*Cg)  this group's [Q|K|V] weight; 1/sqrt(D) pre-folded into Q cols
    wproj_ref : (Cg, C)    rows of W_proj owned by this group's heads
    out_ref   : (Np, C)    partial output of this group for this batch element
    ctx_ref   : (Np, Cg)   VMEM scratch holding all heads' contexts (compute dtype)
    """
    Np, C = x_ref.shape
    D = head_dim
    Hg = heads_per_group
    Cg = Hg * D
    cdt = x_ref.dtype                        # MXU input dtype (f32 or bf16)

    # QKV projection for this group's heads (single K=C matmul, f32 accumulation).
    qkv = jnp.dot(x_ref[...], wqkv_ref[...],
                  preferred_element_type=jnp.float32).astype(cdt)       # (Np, 3*Cg)

    # Additive key mask for zero-padded sequence positions (static Python condition:
    # no runtime cost when the sequence is already a multiple of the pad unit).
    if n_valid < Np:
        key_ids = jax.lax.broadcasted_iota(jnp.int32, (1, Np), 1)
        key_bias = jnp.where(key_ids < n_valid, 0.0, -1e30).astype(jnp.float32)
    else:
        key_bias = None

    for h in range(Hg):                      # short, fully unrolled head loop
        q = qkv[:, h * D:(h + 1) * D]                                   # (Np, D)
        k = qkv[:, Cg + h * D:Cg + (h + 1) * D]                         # (Np, D)
        v = qkv[:, 2 * Cg + h * D:2 * Cg + (h + 1) * D]                 # (Np, D)

        # q @ k^T: contract K's feature axis directly (no explicit transpose op).
        s = jnp.einsum('nd,md->nm', q, k,
                       preferred_element_type=jnp.float32)              # (Np, Np) f32
        if key_bias is not None:
            s = s + key_bias
        s = s - jnp.max(s, axis=-1, keepdims=True)
        p = jnp.exp(s)
        denom = jnp.sum(p, axis=-1, keepdims=True)                      # (Np, 1)

        # Unnormalized PV matmul, then normalize the (Np, D) context (not the (Np, Np)
        # probabilities) using the EUP approximate reciprocal.
        o = jnp.dot(p.astype(cdt), v, preferred_element_type=jnp.float32)   # (Np, D)
        ctx_ref[:, h * D:(h + 1) * D] = (
            o * pl.reciprocal(denom, approx=True)).astype(cdt)

    # Single output projection for the whole group (K = Cg), written straight to out_ref.
    out_ref[...] = jnp.dot(ctx_ref[...], wproj_ref[...],
                           preferred_element_type=jnp.float32).astype(out_ref.dtype)


def _prepare_group_weights(w_qkv, w_proj, num_heads, num_groups, compute_dtype):
    """Host-side, one-time weight prep: fold scale into Q, split per head-group, cast."""
    C = w_proj.shape[0]
    D = C // num_heads
    Hg = num_heads // num_groups
    Cg = Hg * D
    scale = D ** (-0.5)

    wq = w_qkv[:, 0 * C:1 * C] * scale       # fold the attention scale into the Q weight
    wk = w_qkv[:, 1 * C:2 * C]
    wv = w_qkv[:, 2 * C:3 * C]

    wqkv_groups = jnp.stack(
        [jnp.concatenate([wq[:, g * Cg:(g + 1) * Cg],
                          wk[:, g * Cg:(g + 1) * Cg],
                          wv[:, g * Cg:(g + 1) * Cg]], axis=1)
         for g in range(num_groups)], axis=0)                              # (G, C, 3*Cg)
    wproj_groups = jnp.stack(
        [w_proj[g * Cg:(g + 1) * Cg, :] for g in range(num_groups)], axis=0)  # (G, Cg, C)
    return wqkv_groups.astype(compute_dtype), wproj_groups.astype(compute_dtype)


def _tpu_kind():
    try:
        dev = jax.devices()[0]
        if dev.platform == "tpu":
            return dev.device_kind.lower()
    except Exception:
        pass
    return ""


def _is_v7x(kind):
    return ("v7" in kind) or ("7x" in kind)


def attention_pallas(x, w_qkv, w_proj, b_proj, num_heads, *,
                     compute_dtype=None, num_groups=None, vmem_limit_bytes=None):
    """x: (B, N, C); w_qkv: (C, 3C) [qkv_bias=False]; w_proj: (C, C); b_proj: (1, C)."""
    B, N, C = x.shape
    H = num_heads
    D = C // H
    kind = _tpu_kind()

    if compute_dtype is None:
        # bf16 MXU inputs (f32 accumulation) by default on v6e/v7x; f32 elsewhere.
        compute_dtype = jnp.bfloat16 if (_is_v7x(kind) or "v6" in kind) else jnp.float32
    if num_groups is None:
        # Head-group split only pays on v7x (2 TensorCores); pure overhead on v5e/v6e.
        num_groups = 2 if (_is_v7x(kind) and H % 2 == 0) else 1
    if vmem_limit_bytes is None:
        if _is_v7x(kind):
            vmem_limit_bytes = 48 * 1024 * 1024      # 64 MiB physical on v7x
        elif ("v5" in kind) or ("v6" in kind):
            vmem_limit_bytes = 96 * 1024 * 1024      # 128 MiB physical on v5e/v6e
        # else: leave the compiler default on unknown / older chips

    G = num_groups
    assert H % G == 0, "num_heads must be divisible by num_groups"
    Hg = H // G
    Cg = Hg * D

    # Pad the sequence to a sublane-friendly multiple; padded keys are masked in-kernel
    # and padded query rows are sliced off after the call.
    Np = ((N + 15) // 16) * 16
    x_p = x if Np == N else jnp.pad(x, ((0, 0), (0, Np - N), (0, 0)))
    x_flat = x_p.reshape(B * Np, C).astype(compute_dtype)

    wqkv_g, wproj_g = _prepare_group_weights(w_qkv, w_proj, H, G, compute_dtype)

    kernel = functools.partial(_attention_kernel, heads_per_group=Hg,
                               head_dim=D, n_valid=N)

    cp_kwargs = dict(dimension_semantics=("parallel", "parallel"))
    if vmem_limit_bytes is not None:
        cp_kwargs["vmem_limit_bytes"] = vmem_limit_bytes

    partials = pl.pallas_call(
        kernel,
        out_shape=jax.ShapeDtypeStruct((G, B * Np, C), x.dtype),
        grid_spec=pltpu.PrefetchScalarGridSpec(
            num_scalar_prefetch=0,
            # Group axis outermost: each group's weights are fetched once and stay
            # resident across all of that group's batch steps.
            grid=(G, B),
            in_specs=[
                pl.BlockSpec((Np, C), lambda g, b: (b, 0)),                         # x
                pl.BlockSpec((pl.Squeezed(), C, 3 * Cg), lambda g, b: (g, 0, 0)),   # QKV W
                pl.BlockSpec((pl.Squeezed(), Cg, C), lambda g, b: (g, 0, 0)),       # proj W
            ],
            out_specs=pl.BlockSpec((pl.Squeezed(), Np, C), lambda g, b: (g, b, 0)),
            scratch_shapes=[pltpu.VMEM((Np, Cg), compute_dtype)],                   # ctx
        ),
        compiler_params=pltpu.CompilerParams(**cp_kwargs),
    )(x_flat, wqkv_g, wproj_g)

    # Cross-group reduction (no-op slice when G == 1) + bias, fused by XLA.
    out = partials[0] if G == 1 else partials.sum(axis=0)
    out = out + b_proj.astype(out.dtype)
    out = out.reshape(B, Np, C)[:, :N, :]
    return out.astype(x.dtype)


def attention_reference(x, w_qkv, w_proj, b_proj, num_heads):
    """Pure-JAX reference mirroring the PyTorch forward (comb=False, dropout p=0)."""
    B, N, C = x.shape
    H = num_heads
    D = C // H
    scale = D ** (-0.5)
    qkv = x @ w_qkv                                                  # (B, N, 3C)
    qkv = qkv.reshape(B, N, 3, H, D).transpose(2, 0, 3, 1, 4)        # (3, B, H, N, D)
    q, k, v = qkv[0], qkv[1], qkv[2]
    attn = jnp.einsum("bhnd,bhmd->bhnm", q, k) * scale
    attn = jax.nn.softmax(attn, axis=-1)
    o = jnp.einsum("bhnm,bhmd->bhnd", attn, v)                       # (B, H, N, D)
    o = o.transpose(0, 2, 1, 3).reshape(B, N, C)
    return o @ w_proj + b_proj


if __name__ == "__main__":
    # Small shapes consistent with the module: dim=C, num_heads=8 (module default).
    B, N, C = 2, 16, 64
    NUM_HEADS = 8

    key = jax.random.PRNGKey(0)
    k_x, k_qkv, k_proj, k_bias, k_x2 = jax.random.split(key, 5)

    x = jax.random.normal(k_x, (B, N, C), dtype=jnp.float32)
    bound = 1.0 / math.sqrt(C)
    w_qkv = jax.random.uniform(k_qkv, (C, 3 * C), dtype=jnp.float32,
                               minval=-bound, maxval=bound)   # qkv_bias=False -> no bias
    w_proj = jax.random.uniform(k_proj, (C, C), dtype=jnp.float32,
                                minval=-bound, maxval=bound)
    b_proj = jax.random.uniform(k_bias, (1, C), dtype=jnp.float32,
                                minval=-bound, maxval=bound)

    ref = jax.block_until_ready(attention_reference(x, w_qkv, w_proj, b_proj, NUM_HEADS))

    # fp32 MXU inputs, single head group. Tolerance covers the EUP approx reciprocal
    # (~1e-4 relative) plus the host-side scale fold.
    out = jax.block_until_ready(
        attention_pallas(x, w_qkv, w_proj, b_proj, NUM_HEADS,
                         compute_dtype=jnp.float32, num_groups=1))
    assert out.shape == (B, N, C)
    assert jnp.allclose(out, ref, atol=5e-3, rtol=5e-3), "fp32/G=1 Pallas output mismatch"

    # Two head groups (v7x megacore path; runs as a sequential grid on 1-core chips).
    out_g2 = jax.block_until_ready(
        attention_pallas(x, w_qkv, w_proj, b_proj, NUM_HEADS,
                         compute_dtype=jnp.float32, num_groups=2))
    assert jnp.allclose(out_g2, ref, atol=5e-3, rtol=5e-3), "fp32/G=2 Pallas output mismatch"

    # bf16 MXU inputs with f32 accumulation: looser tolerance.
    out_bf16 = jax.block_until_ready(
        attention_pallas(x, w_qkv, w_proj, b_proj, NUM_HEADS,
                         compute_dtype=jnp.bfloat16, num_groups=1))
    assert jnp.allclose(out_bf16, ref, atol=1e-1, rtol=1e-1), "bf16 Pallas output mismatch"

    # Ragged sequence length (N=12 -> padded to 16 + in-kernel key mask).
    x2 = jax.random.normal(k_x2, (B, 12, C), dtype=jnp.float32)
    ref2 = jax.block_until_ready(attention_reference(x2, w_qkv, w_proj, b_proj, NUM_HEADS))
    out2 = jax.block_until_ready(
        attention_pallas(x2, w_qkv, w_proj, b_proj, NUM_HEADS,
                         compute_dtype=jnp.float32, num_groups=1))
    assert out2.shape == (B, 12, C)
    assert jnp.allclose(out2, ref2, atol=5e-3, rtol=5e-3), "ragged-N Pallas output mismatch"

    # Generation-aware defaults (compute dtype / group split / VMEM limit from device_kind).
    out_auto = jax.block_until_ready(
        attention_pallas(x, w_qkv, w_proj, b_proj, NUM_HEADS))
    assert out_auto.shape == (B, N, C)
    assert jnp.allclose(out_auto, ref, atol=1e-1, rtol=1e-1), "auto-default output mismatch"

    print("KERNEL_OK")
</pallas_src>

<mosaic_0001>
module attributes {stable_mosaic.version = 11 : i64} {
  func.func @_attention_kernel(%arg0: i32, %arg1: i32, %arg2: memref<16x64xf32, #tpu.memory_space<vmem>>, %arg3: memref<1x64x192xf32, #tpu.memory_space<vmem>>, %arg4: memref<1x64x64xf32, #tpu.memory_space<vmem>>, %arg5: memref<1x16x64xf32, #tpu.memory_space<vmem>>, %arg6: memref<16x64xf32, #tpu.memory_space<vmem>>) attributes {dimension_semantics = [#tpu.dimension_semantics<parallel>, #tpu.dimension_semantics<parallel>], iteration_bounds = array<i64: 1, 2>, scalar_prefetch = 0 : i64, scratch_operands = 1 : i64, tpu.core_type = #tpu.core_type<tc>, window_params = [{transform_indices = @transform_0, window_bounds = array<i64: 16, 64>}, {transform_indices = @transform_1, window_bounds = array<i64: 1, 64, 192>}, {transform_indices = @transform_2, window_bounds = array<i64: 1, 64, 64>}, {transform_indices = @transform_3, window_bounds = array<i64: 1, 16, 64>}]} {
    %c0 = arith.constant 0 : index
    %c0_0 = arith.constant 0 : index
    %0 = vector.load %arg2[%c0, %c0_0] : memref<16x64xf32, #tpu.memory_space<vmem>>, vector<16x64xf32>
    %c0_1 = arith.constant 0 : index
    %c0_2 = arith.constant 0 : index
    %c0_3 = arith.constant 0 : index
    %1 = vector.load %arg3[%c0_1, %c0_2, %c0_3] : memref<1x64x192xf32, #tpu.memory_space<vmem>>, vector<1x64x192xf32>
    %2 = vector.shape_cast %1 : vector<1x64x192xf32> to vector<64x192xf32>
    %cst = arith.constant dense<0.000000e+00> : vector<16x192xf32>
    %3 = tpu.matmul %0, %2, %cst {dimension_numbers = #tpu.dot_dimension_numbers<[1], [0], [0], [1], [0, 0, 1, 1], [], []>} : vector<16x64xf32>, vector<64x192xf32>, vector<16x192xf32> -> vector<16x192xf32>
    %4 = vector.extract_strided_slice %3 {offsets = [0, 0], sizes = [16, 8], strides = [1, 1]} : vector<16x192xf32> to vector<16x8xf32>
    %5 = vector.extract_strided_slice %3 {offsets = [0, 64], sizes = [16, 8], strides = [1, 1]} : vector<16x192xf32> to vector<16x8xf32>
    %6 = vector.extract_strided_slice %3 {offsets = [0, 128], sizes = [16, 8], strides = [1, 1]} : vector<16x192xf32> to vector<16x8xf32>
    "tpu.trace_start"() <{level = 10 : i32, message = "nd,md->nm"}> : () -> ()
    %cst_4 = arith.constant dense<0.000000e+00> : vector<16x16xf32>
    %7 = tpu.matmul %4, %5, %cst_4 {dimension_numbers = #tpu.dot_dimension_numbers<[1], [1], [0], [0], [0, 0, 1, 0], [], []>} : vector<16x8xf32>, vector<16x8xf32>, vector<16x16xf32> -> vector<16x16xf32>
    "tpu.trace_stop"() : () -> ()
    %cst_5 = arith.constant dense<0xFF800000> : vector<16xf32>
    %8 = vector.multi_reduction <maximumf>, %7, %cst_5 [1] : vector<16x16xf32> to vector<16xf32>
    %9 = vector.shape_cast %8 : vector<16xf32> to vector<16x1xf32>
    %10 = vector.broadcast %9 : vector<16x1xf32> to vector<16x16xf32>
    %11 = arith.subf %7, %10 : vector<16x16xf32>
    %12 = math.exp %11 : vector<16x16xf32>
    %cst_6 = arith.constant dense<0.000000e+00> : vector<16xf32>
    %13 = vector.multi_reduction <add>, %12, %cst_6 [1] : vector<16x16xf32> to vector<16xf32>
    %14 = vector.shape_cast %13 : vector<16xf32> to vector<16x1xf32>
    %cst_7 = arith.constant dense<0.000000e+00> : vector<16x8xf32>
    %15 = tpu.matmul %12, %6, %cst_7 {dimension_numbers = #tpu.dot_dimension_numbers<[1], [0], [0], [1], [0, 0, 1, 1], [], []>} : vector<16x16xf32>, vector<16x8xf32>, vector<16x8xf32> -> vector<16x8xf32>
    %16 = tpu.reciprocal %14 {approx = true} : vector<16x1xf32> -> vector<16x1xf32>
    %17 = vector.broadcast %16 : vector<16x1xf32> to vector<16x8xf32>
    %18 = arith.mulf %15, %17 : vector<16x8xf32>
    %c0_8 = arith.constant 0 : index
    %c0_9 = arith.constant 0 : index
    %19 = vector.load %arg6[%c0_8, %c0_9] : memref<16x64xf32, #tpu.memory_space<vmem>>, vector<16x8xf32>
    tpu.vector_store %arg6[%c0_8, %c0_9], %18 {strides = array<i32>} : memref<16x64xf32, #tpu.memory_space<vmem>>, vector<16x8xf32>,
    %20 = vector.extract_strided_slice %3 {offsets = [0, 8], sizes = [16, 8], strides = [1, 1]} : vector<16x192xf32> to vector<16x8xf32>
    %21 = vector.extract_strided_slice %3 {offsets = [0, 72], sizes = [16, 8], strides = [1, 1]} : vector<16x192xf32> to vector<16x8xf32>
    %22 = vector.extract_strided_slice %3 {offsets = [0, 136], sizes = [16, 8], strides = [1, 1]} : vector<16x192xf32> to vector<16x8xf32>
    "tpu.trace_start"() <{level = 10 : i32, message = "nd,md->nm"}> : () -> ()
    %cst_10 = arith.constant dense<0.000000e+00> : vector<16x16xf32>
    %23 = tpu.matmul %20, %21, %cst_10 {dimension_numbers = #tpu.dot_dimension_numbers<[1], [1], [0], [0], [0, 0, 1, 0], [], []>} : vector<16x8xf32>, vector<16x8xf32>, vector<16x16xf32> -> vector<16x16xf32>
    "tpu.trace_stop"() : () -> ()
    %cst_11 = arith.constant dense<0xFF800000> : vector<16xf32>
    %24 = vector.multi_reduction <maximumf>, %23, %cst_11 [1] : vector<16x16xf32> to vector<16xf32>
    %25 = vector.shape_cast %24 : vector<16xf32> to vector<16x1xf32>
    %26 = vector.broadcast %25 : vector<16x1xf32> to vector<16x16xf32>
    %27 = arith.subf %23, %26 : vector<16x16xf32>
    %28 = math.exp %27 : vector<16x16xf32>
    %cst_12 = arith.constant dense<0.000000e+00> : vector<16xf32>
    %29 = vector.multi_reduction <add>, %28, %cst_12 [1] : vector<16x16xf32> to vector<16xf32>
    %30 = vector.shape_cast %29 : vector<16xf32> to vector<16x1xf32>
    %cst_13 = arith.constant dense<0.000000e+00> : vector<16x8xf32>
    %31 = tpu.matmul %28, %22, %cst_13 {dimension_numbers = #tpu.dot_dimension_numbers<[1], [0], [0], [1], [0, 0, 1, 1], [], []>} : vector<16x16xf32>, vector<16x8xf32>, vector<16x8xf32> -> vector<16x8xf32>
    %32 = tpu.reciprocal %30 {approx = true} : vector<16x1xf32> -> vector<16x1xf32>
    %33 = vector.broadcast %32 : vector<16x1xf32> to vector<16x8xf32>
    %34 = arith.mulf %31, %33 : vector<16x8xf32>
    %c0_14 = arith.constant 0 : index
    %c8 = arith.constant 8 : index
    %35 = vector.load %arg6[%c0_14, %c8] : memref<16x64xf32, #tpu.memory_space<vmem>>, vector<16x8xf32>
    tpu.vector_store %arg6[%c0_14, %c8], %34 {strides = array<i32>} : memref<16x64xf32, #tpu.memory_space<vmem>>, vector<16x8xf32>,
    %36 = vector.extract_strided_slice %3 {offsets = [0, 16], sizes = [16, 8], strides = [1, 1]} : vector<16x192xf32> to vector<16x8xf32>
    %37 = vector.extract_strided_slice %3 {offsets = [0, 80], sizes = [16, 8], strides = [1, 1]} : vector<16x192xf32> to vector<16x8xf32>
    %38 = vector.extract_strided_slice %3 {offsets = [0, 144], sizes = [16, 8], strides = [1, 1]} : vector<16x192xf32> to vector<16x8xf32>
    "tpu.trace_start"() <{level = 10 : i32, message = "nd,md->nm"}> : () -> ()
    %cst_15 = arith.constant dense<0.000000e+00> : vector<16x16xf32>
    %39 = tpu.matmul %36, %37, %cst_15 {dimension_numbers = #tpu.dot_dimension_numbers<[1], [1], [0], [0], [0, 0, 1, 0], [], []>} : vector<16x8xf32>, vector<16x8xf32>, vector<16x16xf32> -> vector<16x16xf32>
    "tpu.trace_stop"() : () -> ()
    %cst_16 = arith.constant dense<0xFF800000> : vector<16xf32>
    %40 = vector.multi_reduction <maximumf>, %39, %cst_16 [1] : vector<16x16xf32> to vector<16xf32>
    %41 = vector.shape_cast %40 : vector<16xf32> to vector<16x1xf32>
    %42 = vector.broadcast %41 : vector<16x1xf32> to vector<16x16xf32>
    %43 = arith.subf %39, %42 : vector<16x16xf32>
    %44 = math.exp %43 : vector<16x16xf32>
    %cst_17 = arith.constant dense<0.000000e+00> : vector<16xf32>
    %45 = vector.multi_reduction <add>, %44, %cst_17 [1] : vector<16x16xf32> to vector<16xf32>
    %46 = vector.shape_cast %45 : vector<16xf32> to vector<16x1xf32>
    %cst_18 = arith.constant dense<0.000000e+00> : vector<16x8xf32>
    %47 = tpu.matmul %44, %38, %cst_18 {dimension_numbers = #tpu.dot_dimension_numbers<[1], [0], [0], [1], [0, 0, 1, 1], [], []>} : vector<16x16xf32>, vector<16x8xf32>, vector<16x8xf32> -> vector<16x8xf32>
    %48 = tpu.reciprocal %46 {approx = true} : vector<16x1xf32> -> vector<16x1xf32>
    %49 = vector.broadcast %48 : vector<16x1xf32> to vector<16x8xf32>
    %50 = arith.mulf %47, %49 : vector<16x8xf32>
    %c0_19 = arith.constant 0 : index
    %c16 = arith.constant 16 : index
    %51 = vector.load %arg6[%c0_19, %c16] : memref<16x64xf32, #tpu.memory_space<vmem>>, vector<16x8xf32>
    tpu.vector_store %arg6[%c0_19, %c16], %50 {strides = array<i32>} : memref<16x64xf32, #tpu.memory_space<vmem>>, vector<16x8xf32>,
    %52 = vector.extract_strided_slice %3 {offsets = [0, 24], sizes = [16, 8], strides = [1, 1]} : vector<16x192xf32> to vector<16x8xf32>
    %53 = vector.extract_strided_slice %3 {offsets = [0, 88], sizes = [16, 8], strides = [1, 1]} : vector<16x192xf32> to vector<16x8xf32>
    %54 = vector.extract_strided_slice %3 {offsets = [0, 152], sizes = [16, 8], strides = [1, 1]} : vector<16x192xf32> to vector<16x8xf32>
    "tpu.trace_start"() <{level = 10 : i32, message = "nd,md->nm"}> : () -> ()
    %cst_20 = arith.constant dense<0.000000e+00> : vector<16x16xf32>
    %55 = tpu.matmul %52, %53, %cst_20 {dimension_numbers = #tpu.dot_dimension_numbers<[1], [1], [0], [0], [0, 0, 1, 0], [], []>} : vector<16x8xf32>, vector<16x8xf32>, vector<16x16xf32> -> vector<16x16xf32>
    "tpu.trace_stop"() : () -> ()
    %cst_21 = arith.constant dense<0xFF800000> : vector<16xf32>
    %56 = vector.multi_reduction <maximumf>, %55, %cst_21 [1] : vector<16x16xf32> to vector<16xf32>
    %57 = vector.shape_cast %56 : vector<16xf32> to vector<16x1xf32>
    %58 = vector.broadcast %57 : vector<16x1xf32> to vector<16x16xf32>
    %59 = arith.subf %55, %58 : vector<16x16xf32>
    %60 = math.exp %59 : vector<16x16xf32>
    %cst_22 = arith.constant dense<0.000000e+00> : vector<16xf32>
    %61 = vector.multi_reduction <add>, %60, %cst_22 [1] : vector<16x16xf32> to vector<16xf32>
    %62 = vector.shape_cast %61 : vector<16xf32> to vector<16x1xf32>
    %cst_23 = arith.constant dense<0.000000e+00> : vector<16x8xf32>
    %63 = tpu.matmul %60, %54, %cst_23 {dimension_numbers = #tpu.dot_dimension_numbers<[1], [0], [0], [1], [0, 0, 1, 1], [], []>} : vector<16x16xf32>, vector<16x8xf32>, vector<16x8xf32> -> vector<16x8xf32>
    %64 = tpu.reciprocal %62 {approx = true} : vector<16x1xf32> -> vector<16x1xf32>
    %65 = vector.broadcast %64 : vector<16x1xf32> to vector<16x8xf32>
    %66 = arith.mulf %63, %65 : vector<16x8xf32>
    %c0_24 = arith.constant 0 : index
    %c24 = arith.constant 24 : index
    %67 = vector.load %arg6[%c0_24, %c24] : memref<16x64xf32, #tpu.memory_space<vmem>>, vector<16x8xf32>
    tpu.vector_store %arg6[%c0_24, %c24], %66 {strides = array<i32>} : memref<16x64xf32, #tpu.memory_space<vmem>>, vector<16x8xf32>,
    %68 = vector.extract_strided_slice %3 {offsets = [0, 32], sizes = [16, 8], strides = [1, 1]} : vector<16x192xf32> to vector<16x8xf32>
    %69 = vector.extract_strided_slice %3 {offsets = [0, 96], sizes = [16, 8], strides = [1, 1]} : vector<16x192xf32> to vector<16x8xf32>
    %70 = vector.extract_strided_slice %3 {offsets = [0, 160], sizes = [16, 8], strides = [1, 1]} : vector<16x192xf32> to vector<16x8xf32>
    "tpu.trace_start"() <{level = 10 : i32, message = "nd,md->nm"}> : () -> ()
    %cst_25 = arith.constant dense<0.000000e+00> : vector<16x16xf32>
    %71 = tpu.matmul %68, %69, %cst_25 {dimension_numbers = #tpu.dot_dimension_numbers<[1], [1], [0], [0], [0, 0, 1, 0], [], []>} : vector<16x8xf32>, vector<16x8xf32>, vector<16x16xf32> -> vector<16x16xf32>
    "tpu.trace_stop"() : () -> ()
    %cst_26 = arith.constant dense<0xFF800000> : vector<16xf32>
    %72 = vector.multi_reduction <maximumf>, %71, %cst_26 [1] : vector<16x16xf32> to vector<16xf32>
    %73 = vector.shape_cast %72 : vector<16xf32> to vector<16x1xf32>
    %74 = vector.broadcast %73 : vector<16x1xf32> to vector<16x16xf32>
    %75 = arith.subf %71, %74 : vector<16x16xf32>
    %76 = math.exp %75 : vector<16x16xf32>
    %cst_27 = arith.constant dense<0.000000e+00> : vector<16xf32>
    %77 = vector.multi_reduction <add>, %76, %cst_27 [1] : vector<16x16xf32> to vector<16xf32>
    %78 = vector.shape_cast %77 : vector<16xf32> to vector<16x1xf32>
    %cst_28 = arith.constant dense<0.000000e+00> : vector<16x8xf32>
    %79 = tpu.matmul %76, %70, %cst_28 {dimension_numbers = #tpu.dot_dimension_numbers<[1], [0], [0], [1], [0, 0, 1, 1], [], []>} : vector<16x16xf32>, vector<16x8xf32>, vector<16x8xf32> -> vector<16x8xf32>
    %80 = tpu.reciprocal %78 {approx = true} : vector<16x1xf32> -> vector<16x1xf32>
    %81 = vector.broadcast %80 : vector<16x1xf32> to vector<16x8xf32>
    %82 = arith.mulf %79, %81 : vector<16x8xf32>
    %c0_29 = arith.constant 0 : index
    %c32 = arith.constant 32 : index
    %83 = vector.load %arg6[%c0_29, %c32] : memref<16x64xf32, #tpu.memory_space<vmem>>, vector<16x8xf32>
    tpu.vector_store %arg6[%c0_29, %c32], %82 {strides = array<i32>} : memref<16x64xf32, #tpu.memory_space<vmem>>, vector<16x8xf32>,
    %84 = vector.extract_strided_slice %3 {offsets = [0, 40], sizes = [16, 8], strides = [1, 1]} : vector<16x192xf32> to vector<16x8xf32>
    %85 = vector.extract_strided_slice %3 {offsets = [0, 104], sizes = [16, 8], strides = [1, 1]} : vector<16x192xf32> to vector<16x8xf32>
    %86 = vector.extract_strided_slice %3 {offsets = [0, 168], sizes = [16, 8], strides = [1, 1]} : vector<16x192xf32> to vector<16x8xf32>
    "tpu.trace_start"() <{level = 10 : i32, message = "nd,md->nm"}> : () -> ()
    %cst_30 = arith.constant dense<0.000000e+00> : vector<16x16xf32>
    %87 = tpu.matmul %84, %85, %cst_30 {dimension_numbers = #tpu.dot_dimension_numbers<[1], [1], [0], [0], [0, 0, 1, 0], [], []>} : vector<16x8xf32>, vector<16x8xf32>, vector<16x16xf32> -> vector<16x16xf32>
    "tpu.trace_stop"() : () -> ()
    %cst_31 = arith.constant dense<0xFF800000> : vector<16xf32>
    %88 = vector.multi_reduction <maximumf>, %87, %cst_31 [1] : vector<16x16xf32> to vector<16xf32>
    %89 = vector.shape_cast %88 : vector<16xf32> to vector<16x1xf32>
    %90 = vector.broadcast %89 : vector<16x1xf32> to vector<16x16xf32>
    %91 = arith.subf %87, %90 : vector<16x16xf32>
    %92 = math.exp %91 : vector<16x16xf32>
    %cst_32 = arith.constant dense<0.000000e+00> : vector<16xf32>
    %93 = vector.multi_reduction <add>, %92, %cst_32 [1] : vector<16x16xf32> to vector<16xf32>
    %94 = vector.shape_cast %93 : vector<16xf32> to vector<16x1xf32>
    %cst_33 = arith.constant dense<0.000000e+00> : vector<16x8xf32>
    %95 = tpu.matmul %92, %86, %cst_33 {dimension_numbers = #tpu.dot_dimension_numbers<[1], [0], [0], [1], [0, 0, 1, 1], [], []>} : vector<16x16xf32>, vector<16x8xf32>, vector<16x8xf32> -> vector<16x8xf32>
    %96 = tpu.reciprocal %94 {approx = true} : vector<16x1xf32> -> vector<16x1xf32>
    %97 = vector.broadcast %96 : vector<16x1xf32> to vector<16x8xf32>
    %98 = arith.mulf %95, %97 : vector<16x8xf32>
    %c0_34 = arith.constant 0 : index
    %c40 = arith.constant 40 : index
    %99 = vector.load %arg6[%c0_34, %c40] : memref<16x64xf32, #tpu.memory_space<vmem>>, vector<16x8xf32>
    tpu.vector_store %arg6[%c0_34, %c40], %98 {strides = array<i32>} : memref<16x64xf32, #tpu.memory_space<vmem>>, vector<16x8xf32>,
    %100 = vector.extract_strided_slice %3 {offsets = [0, 48], sizes = [16, 8], strides = [1, 1]} : vector<16x192xf32> to vector<16x8xf32>
    %101 = vector.extract_strided_slice %3 {offsets = [0, 112], sizes = [16, 8], strides = [1, 1]} : vector<16x192xf32> to vector<16x8xf32>
    %102 = vector.extract_strided_slice %3 {offsets = [0, 176], sizes = [16, 8], strides = [1, 1]} : vector<16x192xf32> to vector<16x8xf32>
    "tpu.trace_start"() <{level = 10 : i32, message = "nd,md->nm"}> : () -> ()
    %cst_35 = arith.constant dense<0.000000e+00> : vector<16x16xf32>
    %103 = tpu.matmul %100, %101, %cst_35 {dimension_numbers = #tpu.dot_dimension_numbers<[1], [1], [0], [0], [0, 0, 1, 0], [], []>} : vector<16x8xf32>, vector<16x8xf32>, vector<16x16xf32> -> vector<16x16xf32>
    "tpu.trace_stop"() : () -> ()
    %cst_36 = arith.constant dense<0xFF800000> : vector<16xf32>
    %104 = vector.multi_reduction <maximumf>, %103, %cst_36 [1] : vector<16x16xf32> to vector<16xf32>
    %105 = vector.shape_cast %104 : vector<16xf32> to vector<16x1xf32>
    %106 = vector.broadcast %105 : vector<16x1xf32> to vector<16x16xf32>
    %107 = arith.subf %103, %106 : vector<16x16xf32>
    %108 = math.exp %107 : vector<16x16xf32>
    %cst_37 = arith.constant dense<0.000000e+00> : vector<16xf32>
    %109 = vector.multi_reduction <add>, %108, %cst_37 [1] : vector<16x16xf32> to vector<16xf32>
    %110 = vector.shape_cast %109 : vector<16xf32> to vector<16x1xf32>
    %cst_38 = arith.constant dense<0.000000e+00> : vector<16x8xf32>
    %111 = tpu.matmul %108, %102, %cst_38 {dimension_numbers = #tpu.dot_dimension_numbers<[1], [0], [0], [1], [0, 0, 1, 1], [], []>} : vector<16x16xf32>, vector<16x8xf32>, vector<16x8xf32> -> vector<16x8xf32>
    %112 = tpu.reciprocal %110 {approx = true} : vector<16x1xf32> -> vector<16x1xf32>
    %113 = vector.broadcast %112 : vector<16x1xf32> to vector<16x8xf32>
    %114 = arith.mulf %111, %113 : vector<16x8xf32>
    %c0_39 = arith.constant 0 : index
    %c48 = arith.constant 48 : index
    %115 = vector.load %arg6[%c0_39, %c48] : memref<16x64xf32, #tpu.memory_space<vmem>>, vector<16x8xf32>
    tpu.vector_store %arg6[%c0_39, %c48], %114 {strides = array<i32>} : memref<16x64xf32, #tpu.memory_space<vmem>>, vector<16x8xf32>,
    %116 = vector.extract_strided_slice %3 {offsets = [0, 56], sizes = [16, 8], strides = [1, 1]} : vector<16x192xf32> to vector<16x8xf32>
    %117 = vector.extract_strided_slice %3 {offsets = [0, 120], sizes = [16, 8], strides = [1, 1]} : vector<16x192xf32> to vector<16x8xf32>
    %118 = vector.extract_strided_slice %3 {offsets = [0, 184], sizes = [16, 8], strides = [1, 1]} : vector<16x192xf32> to vector<16x8xf32>
    "tpu.trace_start"() <{level = 10 : i32, message = "nd,md->nm"}> : () -> ()
    %cst_40 = arith.constant dense<0.000000e+00> : vector<16x16xf32>
    %119 = tpu.matmul %116, %117, %cst_40 {dimension_numbers = #tpu.dot_dimension_numbers<[1], [1], [0], [0], [0, 0, 1, 0], [], []>} : vector<16x8xf32>, vector<16x8xf32>, vector<16x16xf32> -> vector<16x16xf32>
    "tpu.trace_stop"() : () -> ()
    %cst_41 = arith.constant dense<0xFF800000> : vector<16xf32>
    %120 = vector.multi_reduction <maximumf>, %119, %cst_41 [1] : vector<16x16xf32> to vector<16xf32>
    %121 = vector.shape_cast %120 : vector<16xf32> to vector<16x1xf32>
    %122 = vector.broadcast %121 : vector<16x1xf32> to vector<16x16xf32>
    %123 = arith.subf %119, %122 : vector<16x16xf32>
    %124 = math.exp %123 : vector<16x16xf32>
    %cst_42 = arith.constant dense<0.000000e+00> : vector<16xf32>
    %125 = vector.multi_reduction <add>, %124, %cst_42 [1] : vector<16x16xf32> to vector<16xf32>
    %126 = vector.shape_cast %125 : vector<16xf32> to vector<16x1xf32>
    %cst_43 = arith.constant dense<0.000000e+00> : vector<16x8xf32>
    %127 = tpu.matmul %124, %118, %cst_43 {dimension_numbers = #tpu.dot_dimension_numbers<[1], [0], [0], [1], [0, 0, 1, 1], [], []>} : vector<16x16xf32>, vector<16x8xf32>, vector<16x8xf32> -> vector<16x8xf32>
    %128 = tpu.reciprocal %126 {approx = true} : vector<16x1xf32> -> vector<16x1xf32>
    %129 = vector.broadcast %128 : vector<16x1xf32> to vector<16x8xf32>
    %130 = arith.mulf %127, %129 : vector<16x8xf32>
    %c0_44 = arith.constant 0 : index
    %c56 = arith.constant 56 : index
    %131 = vector.load %arg6[%c0_44, %c56] : memref<16x64xf32, #tpu.memory_space<vmem>>, vector<16x8xf32>
    tpu.vector_store %arg6[%c0_44, %c56], %130 {strides = array<i32>} : memref<16x64xf32, #tpu.memory_space<vmem>>, vector<16x8xf32>,
    %c0_45 = arith.constant 0 : index
    %c0_46 = arith.constant 0 : index
    %132 = vector.load %arg6[%c0_45, %c0_46] : memref<16x64xf32, #tpu.memory_space<vmem>>, vector<16x64xf32>
    %c0_47 = arith.constant 0 : index
    %c0_48 = arith.constant 0 : index
    %c0_49 = arith.constant 0 : index
    %133 = vector.load %arg4[%c0_47, %c0_48, %c0_49] : memref<1x64x64xf32, #tpu.memory_space<vmem>>, vector<1x64x64xf32>
    %134 = vector.shape_cast %133 : vector<1x64x64xf32> to vector<64x64xf32>
    %cst_50 = arith.constant dense<0.000000e+00> : vector<16x64xf32>
    %135 = tpu.matmul %132, %134, %cst_50 {dimension_numbers = #tpu.dot_dimension_numbers<[1], [0], [0], [1], [0, 0, 1, 1], [], []>} : vector<16x64xf32>, vector<64x64xf32>, vector<16x64xf32> -> vector<16x64xf32>
    %c0_51 = arith.constant 0 : index
    %c0_52 = arith.constant 0 : index
    %c0_53 = arith.constant 0 : index
    %136 = vector.load %arg5[%c0_51, %c0_52, %c0_53] : memref<1x16x64xf32, #tpu.memory_space<vmem>>, vector<1x16x64xf32>
    %137 = vector.shape_cast %136 : vector<1x16x64xf32> to vector<16x64xf32>
    %138 = vector.shape_cast %135 : vector<16x64xf32> to vector<1x16x64xf32>
    tpu.vector_store %arg5[%c0_51, %c0_52, %c0_53], %138 {strides = array<i32>} : memref<1x16x64xf32, #tpu.memory_space<vmem>>, vector<1x16x64xf32>,
    return
  }
  func.func @transform_0(%arg0: i32, %arg1: i32) -> (i32, i32) {
    %c0_i32 = arith.constant 0 : i32
    %c0_i32_0 = arith.constant 0 : i32
    return %arg1, %c0_i32 : i32, i32
  }
  func.func @transform_1(%arg0: i32, %arg1: i32) -> (i32, i32, i32) {
    %c0_i32 = arith.constant 0 : i32
    %c0_i32_0 = arith.constant 0 : i32
    %c0_i32_1 = arith.constant 0 : i32
    return %arg0, %c0_i32, %c0_i32_0 : i32, i32, i32
  }
  func.func @transform_2(%arg0: i32, %arg1: i32) -> (i32, i32, i32) {
    %c0_i32 = arith.constant 0 : i32
    %c0_i32_0 = arith.constant 0 : i32
    %c0_i32_1 = arith.constant 0 : i32
    return %arg0, %c0_i32, %c0_i32_0 : i32, i32, i32
  }
  func.func @transform_3(%arg0: i32, %arg1: i32) -> (i32, i32, i32) {
    %c0_i32 = arith.constant 0 : i32
    %c0_i32_0 = arith.constant 0 : i32
    return %arg0, %arg1, %c0_i32 : i32, i32, i32
  }
}

</mosaic_0001>

<bundles_post_ra>
// kernel: tpu_custom_call.1
= control target key start
LH: loop header
LB: loop body
LE: loop exit
PB: predicated region body
PF: predicated region fallthrough
CT: control target
= control target key end

     0   :  { %8 = vsyncpa [#allocation4], 0  ;;  %s2295_s0 = inlined_call_operand.hbm [shape: f32[32,64], index: 0, kind: input, shape index: {}]   ;;  %s2296_s1 = inlined_call_operand.hbm [shape: f32[1,64,192], index: 1, kind: input, shape index: {}]   ;;  %s2297_s2 = inlined_call_operand.hbm [shape: f32[1,64,64], index: 2, kind: input, shape index: {}]   ;;  %s2298_s3 = inlined_call_operand.hbm [shape: f32[1,32,64], index: 3, kind: output, shape index: {}]  }
   0x1   :  { %10 = vsyncpa [#allocation4 + $0x1], 0 }
   0x2   :  { %11 = vsyncpa [#allocation7], 0 }
   0x3   :  { %12 = vsyncpa [#allocation5], 0 }
   0x4   :  { %14 = vsyncpa [#allocation5 + $0x1], 0  ;;  %s1835_s12 = smov 0   ;;  %s1837_s13 = smov 0  }
   0x5   :  { %s1839_s14 = smov 0   ;;  %s1841_s15 = smov 0  }
   0x6   :  { %s1843_s16 = smov 0   ;;  %s1845_s17 = smov 0  }
   0x7 LB: > { %s1336_s18 = sadd.s32 4294967295, %s1791_s17   ;;  %s1337_s19 = sadd.s32 4294967294, %s1791_s17   ;;  %s1791_s17 = sphi %s1845_s17, %s20_s17   ;;  %s1787_s16 = sphi %s1843_s16, %s2308_s16   ;;  %s1783_s15 = sphi %s1841_s15, %s2307_s15   ;;  %s1779_s14 = sphi %s1839_s14, %s2306_s14   ;;  %s1775_s13 = sphi %s1837_s13, %s2305_s13   ;;  %s1771_s12 = sphi %s1835_s12, %s2304_s12  }
   0x8   : > { %p52_p0 = scmp.ne.s32.totalorder %s1775_s13, %s1771_s12  ;;  %p1871_p1 = scmp.eq.s32.totalorder %s1336_s18, 0 }
   0x9   : > { %p136_p2 = scmp.eq.s32.totalorder %s1337_s19, 1  ;;  %p1338_p4 = scmp.ge.s32.totalorder %s1791_s17, 1 }
   0xa   : > { %p1877_p3 = por %p1871_p1, %p52_p0  ;;  %p143_p6 = scmp.lt.s32.totalorder %s1791_s17, 3 }
   0xb   : > { %p1882_p5 = por %p136_p2, %p52_p0  ;;  %s157_s25 = sshll.u32 %s2296_s1, 4  ;;  %s158_s25 = int_to_ptr.hbm [resolvable:$true] %s157_s25 }
   0xc   : > { %p1890_p7 = pnand %p1338_p4, %p143_p6  ;;  %s1793_s27 = smov [#allocation6]  }
   0xd   : > { %s159_s28 = sshll.u32 %s1793_s27, 4  ;;  %p1341_p10 = scmp.ge.s32.totalorder %s1791_s17, 2  ;;  %s160_s28 = int_to_ptr.vmem [resolvable:$true] %s159_s28 }
   0xe   : > { %p1425_p8 = pneg %p1890_p7  ;;  %s174_s4 = sshll.u32 %s2297_s2, 4  ;;  %s175_s4 = int_to_ptr.hbm [resolvable:$true] %s174_s4 }
   0xf   : > { %s1794_s5 = smov 256   ;;  %s1795_s6 = smov 16  }
  0x10   : > { %p1426_p9 = pnand %p1425_p8, %p1871_p1  ;;  %s1796_s7 = smov [#allocation8]  }
  0x11   : > { %s176_s8 = sshll.u32 %s1796_s7, 4  ;;  %s1797_s9 = smov 128   ;;  %s177_s8 = int_to_ptr.vmem [resolvable:$true] %s176_s8 }
  0x12   : > { %1428 = dma.hbm_to_vmem [thread:$0]  (!%p1426_p9), %s158_s25, 2048, %s160_s28, [#allocation7], %s1794_s5, %s1794_s5, %s1795_s6  }
  0x13   : > { %s1798_s10 = smov 8   ;;  %p130_p11 = scmp.eq.s32.totalorder %s1336_s18, 1 }
  0x14   : > { %1431 = dma.hbm_to_vmem [thread:$0]  (!%p1426_p9), %s175_s4, 1024, %s177_s8, [#allocation7], %s1797_s9, %s1797_s9, %s1798_s10  }
  0x15   : > { %s29_s11 = sadd.s32 1, %s1787_s16  ;;  %s39_s19 = sadd.s32 1, %s1779_s14 }
  0x16   : > { %p30_p12 = scmp.ge.s32.totalorder %s29_s11, 2  ;;  %p46_p13 = scmp.ne.s32.totalorder %s1779_s14, %s1775_s13 }
  0x17   : > { %p47_p0 = scmp.eq.s32.totalorder %s1791_s17, 0  ;;  %p1442_p4 = scmp.lt.s32.totalorder %s1791_s17, 2 }
  0x18   : > { %s2310_s11 = smov (%p30_p12, %s29_s11), 0  ;;  %p1914_p2 = por %p130_p11, %p46_p13 }
  0x19   : > { %s36_s24 = ssub.s32 %s1787_s16, %s2310_s11  ;;  %s190_s25 = sand.u32 1, %s1779_s14  }
  0x1a   : > { %p37_p6 = scmp.eq.s32.totalorder %s36_s24, 0  ;;  %p48_p8 = por %p47_p0, %p46_p13 }
  0x1b   : > { %s1342_s27 = sshll.u32 %s190_s25, 4  ;;  %s1409_s18 = sshll.u32 %s1787_s16, 4 }
  0x1c   : > { %s1924_s28 = scalar_select %p37_p6, %s1779_s14, %s39_s19  }
  0x1d   : > { %s199_s4 = scalar_lea.hbm %s2295_s0, %s1409_s18  ;;  %s194_s6 = scalar_lea.vmem [#allocation3], %s1342_s27 }
  0x1e   : > { %s200_s5 = sshll.u32 %s199_s4, 4  ;;  %s202_s7 = sshll.u32 %s194_s6, 4  ;;  %s201_s5 = int_to_ptr.hbm [resolvable:$true] %s200_s5  ;;  %s203_s7 = int_to_ptr.vmem [resolvable:$true] %s202_s7 }
  0x1f   : > { %p1433_p9 = pnand %p1442_p4, %p48_p8  ;;  %s191_s8 = scalar_lea.sflag [#allocation4], %s190_s25 }
  0x20   : > { %214 = sbr.rel (%p1890_p7) target bundleno = 1478 (0x5c6), region = 32  ;;  %s1937_s19 = sand.u32 (!%p1890_p7), 1, %s1775_s13  }
  0x21   : > { %1435 = dma.hbm_to_vmem [thread:$0]  (!%p1433_p9), %s201_s5, 256, %s203_s7, %s191_s8, %s1797_s9, %s1797_s9, %s1798_s10  }
  0x22   : > { %s1346_s24 = sshll.u32 (!%p1890_p7), %s1937_s19, 4  ;;  %s217_s27 = scalar_lea.sflag (!%p1890_p7), [#allocation4], %s1937_s19 }
  0x23   : > { %s1943_s18 = scalar_lea.vmem (!%p1890_p7), [#allocation3], %s1346_s24 }
  0x25   : > { %1758 = dma.done.wait (%p1877_p3), %s217_s27, 256  }
  0x26   : > { %1760 = vsyncadd (%p1877_p3), %s217_s27, 4294967040 }
  0x27   : > { %1762 = dma.done.wait (%p1871_p1), [#allocation7], 3072  }
  0x28   : > { %1764 = vsyncadd (%p1871_p1), [#allocation7], 4294964224  ;;  %v272_v0 = vld [vmem:[#allocation6 + $0x70] sm:$0xff]  ;;  %v270_v1 = vld [vmem:[#allocation6 + $0x60] sm:$0xff]  ;;  %vm274_vm0 = vcmask 523264   ;;  %s1799_s20 = smov 112  }
  0x29   : > { %289 = vmatpush.msra.mxu0 %v272_v0  ;;  %v268_v2 = vld [vmem:[#allocation6 + $0x50] sm:$0xff]  ;;  %v273_v3 = vld [vmem:[#allocation6 + $0x78] sm:$0xff]  ;;  %v271_v4 = vld [vmem:[#allocation6 + $0x68] sm:$0xff]  ;;  %s1800_s21 = smov 56   ;;  %s1801_s26 = smov 104   ;;  %vm333_vm1 = vcmask 64512  }
  0x2a   : > { %v266_v5 = vld [vmem:[#allocation6 + $0x40] sm:$0xff]  ;;  %312 = vmatpush.msra.mxu1 %v273_v3  ;;  %v269_v6 = vld [vmem:[#allocation6 + $0x58] sm:$0xff]  ;;  %v264_v7 = vld [vmem:[#allocation6 + $0x30] sm:$0xff]  ;;  %s1802_s9 = smov 120   ;;  %s1803_s10 = smov 64   ;;  %vm365_vm2 = vcmask 130048  }
  0x2b   : > { %290 = vmatpush.msra.mxu0 %v270_v1  ;;  %v267_v8 = vld [vmem:[#allocation6 + $0x48] sm:$0xff]  ;;  %v262_v9 = vld [vmem:[#allocation6 + $0x20] sm:$0xff]  ;;  %v265_v10 = vld [vmem:[#allocation6 + $0x38] sm:$0xff]  ;;  %s1804_s25 = smov 88   ;;  %s1805_s29 = smov 48   ;;  %vm525_vm3 = vcmask 130112  }
  0x2c   : > { %313 = vmatpush.msra.mxu1 %v271_v4  ;;  %v260_v11 = vld [vmem:[#allocation6 + $0x10] sm:$0xff]  ;;  %v263_v12 = vld [vmem:[#allocation6 + $0x28] sm:$0xff]  ;;  %v258_v13 = vld [vmem:[#allocation6] sm:$0xff]  ;;  %s1806_s30 = smov 40   ;;  %s1807_s4 = smov 24   ;;  %vm632_vm4 = vcmask 195712  }
  0x2d   : > { %291 = vmatpush.msra.mxu0 %v268_v2  ;;  %v256_v14 = vld [vmem:[%s1943_s18] sm:$0xff]  ;;  %v261_v15 = vld [vmem:[#allocation6 + $0x18] sm:$0xff]  ;;  %v259_v16 = vld [vmem:[#allocation6 + $0x8] sm:$0xff]  ;;  %s1808_s5 = smov 32   ;;  %s1809_s6 = smov 96   ;;  %vm739_vm5 = vcmask 261312  }
  0x2e   : > { %314 = vmatpush.msra.mxu1 %v269_v6  ;;  %v257_v17 = vld [vmem:[%s1943_s18 + $0x8] sm:$0xff]  ;;  %s1810_s7 = smov 8   ;;  %s1811_s8 = smov 72   ;;  %vm846_vm6 = vcmask 326912   ;;  %vm953_vm7 = vcmask 392512   ;;  %vm1060_vm8 = vcmask 458112  }
  0x2f   : > { %292 = vmatpush.msra.mxu0 %v266_v5  ;;  %s1812_s27 = smov 16   ;;  %s1813_s18 = smov 80   ;;  %vm1167_vm9 = vcmask 523712  }
  0x30   : > { %315 = vmatpush.msra.mxu1 %v267_v8 }
  0x31   : > { %293 = vmatpush.msra.mxu0 %v264_v7 }
  0x32   : > { %316 = vmatpush.msra.mxu1 %v265_v10 }
  0x33   : > { %294 = vmatpush.msra.mxu0 %v262_v9 }
  0x34   : > { %317 = vmatpush.msra.mxu1 %v263_v12 }
  0x35   : > { %295 = vmatpush.msra.mxu0 %v260_v11 }
  0x36   : > { %318 = vmatpush.msra.mxu1 %v261_v15 }
  0x37   : > { %296 = vmatpush.msra.mxu0 %v258_v13 }
  0x38   : > { %1350 = vmatmul.msk.f32.vlgmr.msra.gmra.mxu0 %vm274_vm0, %v256_v14  ;;  %319 = vmatpush.msra.mxu1 %v259_v16 }
  0x39   : > { %1352 = vmatmul.msk.f32.vlgmr.msra.gmra.mxu1 %vm274_vm0, %v256_v14 }
  0x40   : > { %1351 = vmatmul.msk.f32.gmra.mxu0 %vm274_vm0, %v257_v17 }
  0x41   : > { %1353 = vmatmul.msk.f32.gmra.mxu1 %vm274_vm0, %v257_v17 }
  0xb5   : > { %v1959_v18 = vpop.f32.mrf.mxu0 }
  0xb6   : > { %528 = vrot.lane.b32.xlu1 %v1959_v18, %s1799_s20  ;;  %423 = vrot.lane.b32.xlu2 %v1959_v18, %s1800_s21  ;;  %v321_v20 = vpop.f32.mrf.mxu1 }
  0xbd   : > { %v1965_v19 = vpop.f32.mrf.mxu0 }
  0xbe   : > { %635 = vrot.lane.b32.xlu2 %v1959_v18, %s1801_s26  ;;  %421 = vrot.lane.b32.xlu1 %v1965_v19, %s1802_s9  ;;  %v324_v21 = vpop.f32.mrf.mxu1 }
  0xbf   : > { %331 = vrot.lane.b32.xlu0 %v1965_v19, %s1803_s10  ;;  %404 = vmatpush.msra.mxu3 %v324_v21  ;;  %v2051_v43 = vpack.i.bf16 %v321_v20, %v324_v21 }
  0xc1   : > { %405 = vmatpush.msra.mxu3 %v321_v20 }
  0xc6   : > { %530 = vrot.lane.b32.xlu1 %v1965_v19, %s1799_s20  ;;  %425 = vrot.lane.b32.xlu2 %v1965_v19, %s1800_s21 }
  0xc7   : > { %329 = vrot.lane.b32.xlu0 %v1959_v18, %s1803_s10 }
  0xce   : > { %851 = vrot.lane.b32.xlu1 %v1965_v19, %s1804_s25  ;;  %532 = vrot.lane.b32.xlu2 %v1959_v18, %s1805_s29 }
  0xcf   : > { %419 = vrot.lane.b32.xlu0 %v1959_v18, %s1802_s9 }
  0xd6   : > { %641 = vrot.lane.b32.xlu2 %v1965_v19, %s1806_s30 }
  0xd7   : > { %639 = vrot.lane.b32.xlu0 %v1959_v18, %s1806_s30 }
  0xde   : > { %849 = vrot.lane.b32.xlu2 %v1959_v18, %s1804_s25 }
  0xdf   : > { %853 = vrot.lane.b32.xlu0 %v1959_v18, %s1807_s4 }
  0xe6   : > { %855 = vrot.lane.b32.xlu2 %v1965_v19, %s1807_s4 }
  0xe7   : > { %534 = vrot.lane.b32.xlu0 %v1965_v19, %s1805_s29 }
  0xee   : > { %746 = vrot.lane.b32.xlu2 %v1959_v18, %s1808_s5 }
  0xef   : > { %637 = vrot.lane.b32.xlu0 %v1965_v19, %s1801_s26 }
  0xf6   : > { %742 = vrot.lane.b32.xlu2 %v1959_v18, %s1809_s6 }
  0xf7   : > { %748 = vrot.lane.b32.xlu0 %v1965_v19, %s1808_s5 }
  0xfe   : > { %744 = vrot.lane.b32.xlu2 %v1965_v19, %s1809_s6 }
  0xff   : > { %1069 = vrot.lane.b32.xlu0 %v1965_v19, %s1810_s7 }
 0x106   : > { %1065 = vrot.lane.b32.xlu2 %v1965_v19, %s1811_s8 }
 0x107   : > { %1063 = vrot.lane.b32.xlu0 %v1959_v18, %s1811_s8 }
 0x10f   : > { %960 = vrot.lane.b32.xlu0 %v1959_v18, %s1812_s27 }
 0x110   : > { %v424_v22 = vpop.permute.xlu2 %423 }
 0x117   : > { %958 = vrot.lane.b32.xlu0 %v1965_v19, %s1813_s18 }
 0x118   : > { %v2015_v23 = vpop.permute.xlu2 %635 }
 0x11f   : > { %1517 = vrot.lane.b32.xlu0 %v2051_v43, %s1802_s9 }
 0x120   : > { %v426_v24 = vpop.permute.xlu2 %425 }
 0x121   : > { %1360 = vmatpush.xpose.msk.msrb.mxu3 %vm333_vm1, %v426_v24 }
 0x125   : > { %1361 = vmatpush.xpose.msk.msrb.mxu3 %vm333_vm1, %v424_v22 }
 0x127   : > { %1527 = vrot.lane.b32.xlu0 %v2051_v43, %s1799_s20  ;;  %s253_s20 = scalar_lea.vmem [#allocation9], %s1346_s24 }
 0x128   : > { %v533_v27 = vpop.permute.xlu2 %532  ;;  %v529_v31 = vpop.permute.xlu1 %528 }
 0x130   : > { %v2027_v29 = vpop.permute.xlu2 %641  ;;  %v2035_v34 = vpop.permute.xlu1 %421 }
 0x131   : > { %v332_v25 = vpop.permute.xlu0 %331 }
 0x132   : > { %1354 = vmatpush.xpose.msk.msra.mxu2 %vm333_vm1, %v332_v25 }
 0x138   : > { %v2031_v32 = vpop.permute.xlu2 %849  ;;  %v531_v37 = vpop.permute.xlu1 %530 }
 0x139   : > { %v330_v26 = vpop.permute.xlu0 %329 }
 0x13a   : > { %1355 = vmatpush.xpose.msk.msra.mxu2 %vm333_vm1, %v330_v26 }
 0x13d   : > { %1356 = vmatmul.msk.f32.vlgmr.msra.gmra.mxu2 %vm333_vm1, %v1959_v18 }
 0x140   : > { %v2037_v36 = vpop.permute.xlu2 %855  ;;  %v852_v60 = vpop.permute.xlu1 %851 }
 0x141   : > { %v2023_v28 = vpop.permute.xlu0 %419 }
 0x145   : > { %1357 = vmatmul.msk.f32.gmra.mxu2 %vm333_vm1, %v1965_v19 }
 0x148   : > { %v747_v39 = vpop.permute.xlu2 %746 }
 0x149   : > { %v2029_v30 = vpop.permute.xlu0 %639 }
 0x150   : > { %v743_v41 = vpop.permute.xlu2 %742 }
 0x151   : > { %v2033_v33 = vpop.permute.xlu0 %853 }
 0x158   : > { %v745_v42 = vpop.permute.xlu2 %744 }
 0x159   : > { %v535_v35 = vpop.permute.xlu0 %534 }
 0x15a   : > { %1366 = vmatpush.xpose.msk.msrb.mxu0 %vm333_vm1, %v535_v35  ;;  %1411 = vmatpush.xpose.msk.msrb.mxu1 %vm333_vm1, %v535_v35 }
 0x15e   : > { %1367 = vmatpush.xpose.msk.msrb.mxu0 %vm333_vm1, %v533_v27  ;;  %1412 = vmatpush.xpose.msk.msrb.mxu1 %vm333_vm1, %v533_v27 }
 0x160   : > { %v1066_v9 = vpop.permute.xlu2 %1065 }
 0x161   : > { %1368 = vmatmul.msk.f32.vlgmr.msrb.gmra.mxu0 %vm333_vm1, %v529_v31  ;;  %1369 = vmatmul.msk.f32.vlgmr.msrb.gmra.mxu1 %vm333_vm1, %v531_v37  ;;  %v2045_v38 = vpop.permute.xlu0 %637 }
 0x169   : > { %v749_v40 = vpop.permute.xlu0 %748 }
 0x16a   : > { %1378 = vmatpush.xpose.msk.msra.mxu0 %vm333_vm1, %v749_v40 }
 0x16e   : > { %1379 = vmatpush.xpose.msk.msra.mxu0 %vm333_vm1, %v747_v39 }
 0x171   : > { %1380 = vmatmul.msk.f32.vlgmr.msra.gmra.mxu0 %vm333_vm1, %v743_v41  ;;  %v1070_v53 = vpop.permute.xlu0 %1069 }
 0x179   : > { %1381 = vmatmul.msk.f32.gmra.mxu0 %vm333_vm1, %v745_v42  ;;  %v2072_v54 = vpop.permute.xlu0 %1063 }
 0x181   : > { %v961_v57 = vpop.permute.xlu0 %960 }
 0x189   : > { %v959_v59 = vpop.permute.xlu0 %958 }
 0x191   : > { %v1518_v61 = vpop.permute.xlu0 %1517 }
 0x192   : > { %v1519_v17 = vunpack.i.l.bf16 %v1518_v61 }
 0x194   : > { %504 = vmatpush.msrb.mxu2 %v1519_v17 }
 0x199   : > { %v1528_v1 = vpop.permute.xlu0 %1527 }
 0x19a   : > { %v1530_v2 = vunpack.i.h.bf16 %v1528_v1  ;;  %v1529_v3 = vunpack.i.l.bf16 %v1528_v1 }
 0x19c   : > { %611 = vmatpush.msra.mxu1 %v1529_v3 }
 0x19e   : > { %612 = vmatpush.msra.mxu1 %v1530_v2 }
 0x1c0   : > { %v359_v44 = vpop.f32.mrf.mxu2 }
 0x1c1   : > { %v366_v45 = vsel %vm365_vm2, %v359_v44, -inf }
 0x1c2   : > { %367 = vmax.xlane.f32.xlu1 %v366_v45 }
 0x1c8   : > { %v362_v46 = vpop.f32.mrf.mxu2 }
 0x1c9   : > { %v369_v47 = vsel %vm365_vm2, %v362_v46, -inf }
 0x1ca   : > { %370 = vmax.xlane.f32.xlu1 %v369_v47 }
 0x1de   : > { %v561_v48 = vpop.f32.mrf.mxu0  ;;  %v2076_v55 = vpop.f32.mrf.mxu1 }
 0x1df   : > { %v567_v49 = vsel %vm365_vm2, %v561_v48, -inf  ;;  %v570_v56 = vsel %vm365_vm2, %v2076_v55, -inf }
 0x1e0   : > { %568 = vmax.xlane.f32.xlu2 %v567_v49 }
 0x1e3   : > { %1067 = vrot.lane.b32.xlu1 %v1959_v18, %s1810_s7 }
 0x1eb   : > { %962 = vrot.lane.b32.xlu1 %v1965_v19, %s1812_s27  ;;  %v1520_v19 = vunpack.i.h.bf16 %v1518_v61 }
 0x1ed   : > { %505 = vmatpush.msrb.mxu2 %v1520_v19 }
 0x1ee   : > { %v2064_v50 = vpop.f32.mrf.mxu0 }
 0x1ef   : > { %v781_v58 = vsel %vm365_vm2, %v2064_v50, -inf }
 0x1f3   : > { %956 = vrot.lane.b32.xlu1 %v1959_v18, %s1813_s18 }
 0x1f6   : > { %v2068_v51 = vpop.f32.mrf.mxu0 }
 0x1f7   : > { %v784_v52 = vsel %vm365_vm2, %v2068_v51, -inf }
 0x1f8   : > { %785 = vmax.xlane.f32.xlu0 %v784_v52  ;;  %1522 = vrot.lane.b32.xlu2 %v2051_v43, %s1801_s26 }
 0x21d   : > { %571 = vmax.xlane.f32.xlu1 %v570_v56 }
 0x225   : > { %782 = vmax.xlane.f32.xlu1 %v781_v58 }
 0x235   : > { %v368_v62 = vpop.xlane.xlu1 %367 }
 0x236   : > { %v372_v63 = vsub.f32 %v359_v44, %v368_v62 }
 0x238   : > { %v374_v0 = vmul.f32 1.442695, %v372_v63 }
 0x23a   : > { %1551 = vpow2.f32 %v374_v0 }
 0x23d   : > { %v371_v4 = vpop.xlane.xlu1 %370 }
 0x23e   : > { %v373_v5 = vsub.f32 %v362_v46, %v371_v4  ;;  %1532 = vrot.lane.b32.xlu1 %v2051_v43, %s1804_s25  ;;  %s1226_s25 = sshll.u32 %s253_s20, 4  ;;  %s1227_s25 = int_to_ptr.vmem [resolvable:$true] %s1226_s25 }
 0x240   : > { %v2084_v6 = vpop.eup %1551  ;;  %v376_v7 = vmul.f32 1.442695, %v373_v5 }
 0x241   : > { %1358 = vmatmul.msk.f32.vlgmr.msra.gmra.mxu3 %vm365_vm2, %v2084_v6 }
 0x242   : > { %1553 = vpow2.f32 %v376_v7  ;;  %1372 = vmatpush.xpose.msk.msra.mxu3 %vm333_vm1, %v2027_v29 }
 0x246   : > { %1373 = vmatpush.xpose.msk.msra.mxu3 %vm333_vm1, %v2029_v30 }
 0x248   : > { %v2092_v8 = vpop.eup %1553 }
 0x249   : > { %1359 = vmatmul.msk.f32.gmra.mxu3 %vm365_vm2, %v2092_v8 }
 0x251   : > { %1362 = vmatmul.msk.f32.vlgmr.msrb.gmra.mxu3 %vm333_vm1, %v2023_v28 }
 0x252   : > { %1384 = vmatpush.xpose.msk.msrb.mxu3 %vm333_vm1, %v2037_v36 }
 0x253   : > { %v569_v10 = vpop.xlane.xlu2 %568 }
 0x254   : > { %v573_v11 = vsub.f32 %v561_v48, %v569_v10 }
 0x255   : > { %v1068_v12 = vpop.permute.xlu1 %1067 }
 0x256   : > { %v575_v13 = vmul.f32 1.442695, %v573_v11  ;;  %1385 = vmatpush.xpose.msk.msrb.mxu3 %vm333_vm1, %v2033_v33 }
 0x258   : > { %1555 = vpow2.f32 %v575_v13 }
 0x259   : > { %1363 = vmatmul.msk.f32.gmra.mxu3 %vm333_vm1, %v2035_v34 }
 0x25b   : > { %v1523_v18 = vpop.permute.xlu2 %1522 }
 0x25c   : > { %v1524_v20 = vunpack.i.l.bf16 %v1523_v18  ;;  %v1525_v21 = vunpack.i.h.bf16 %v1523_v18 }
 0x25d   : > { %v963_v14 = vpop.permute.xlu1 %962 }
 0x25e   : > { %v2104_v15 = vpop.eup %1555  ;;  %1390 = vmatpush.xpose.msk.msrb.mxu0 %vm333_vm1, %v963_v14  ;;  %718 = vmatpush.msra.mxu2 %v1524_v20 }
 0x25f   : > { %1370 = vmatmul.msk.f32.vlgmr.msra.gmra.mxu1 %vm365_vm2, %v2104_v15 }
 0x260   : > { %719 = vmatpush.msra.mxu2 %v1525_v21 }
 0x261   : > { %1374 = vmatmul.msk.f32.vlgmr.msra.gmra.mxu3 %vm333_vm1, %v2015_v23 }
 0x262   : > { %1396 = vmatpush.xpose.msk.msra.mxu3 %vm333_vm1, %v1070_v53  ;;  %1391 = vmatpush.xpose.msk.msrb.mxu0 %vm333_vm1, %v961_v57  ;;  %v579_v57 = vsel %vm365_vm2, %v2104_v15, 0.0 }
 0x265   : > { %v957_v16 = vpop.permute.xlu1 %956 }
 0x266   : > { %1397 = vmatpush.xpose.msk.msra.mxu3 %vm333_vm1, %v1068_v12  ;;  %1392 = vmatmul.msk.f32.vlgmr.msrb.gmra.mxu0 %vm333_vm1, %v957_v16 }
 0x269   : > { %1375 = vmatmul.msk.f32.gmra.mxu3 %vm333_vm1, %v2045_v38 }
 0x26b   : > { %v786_v49 = vpop.xlane.xlu0 %785 }
 0x26e   : > { %1393 = vmatmul.msk.f32.gmra.mxu0 %vm333_vm1, %v959_v59 }
 0x271   : > { %1386 = vmatmul.msk.f32.vlgmr.msrb.gmra.mxu3 %vm333_vm1, %v2031_v32 }
 0x279   : > { %1387 = vmatmul.msk.f32.gmra.mxu3 %vm333_vm1, %v852_v60 }
 0x281   : > { %1398 = vmatmul.msk.f32.vlgmr.msra.gmra.mxu3 %vm333_vm1, %v2072_v54  ;;  %v788_v54 = vsub.f32 %v2068_v51, %v786_v49 }
 0x283   : > { %v791_v56 = vmul.f32 1.442695, %v788_v54 }
 0x289   : > { %1399 = vmatmul.msk.f32.gmra.mxu3 %vm333_vm1, %v1066_v9 }
 0x290   : > { %v572_v22 = vpop.xlane.xlu1 %571 }
 0x291   : > { %v574_v23 = vsub.f32 %v2076_v55, %v572_v22 }
 0x293   : > { %v577_v24 = vmul.f32 1.442695, %v574_v23 }
 0x295   : > { %1557 = vpow2.f32 %v577_v24 }
 0x298   : > { %v783_v48 = vpop.xlane.xlu1 %782 }
 0x299   : > { %v787_v52 = vsub.f32 %v2064_v50, %v783_v48 }
 0x29b   : > { %v2125_v25 = vpop.eup %1557  ;;  %v789_v55 = vmul.f32 1.442695, %v787_v52 }
 0x29c   : > { %1371 = vmatmul.msk.f32.gmra.mxu1 %vm365_vm2, %v2125_v25  ;;  %v582_v49 = vsel %vm365_vm2, %v2125_v25, 0.0 }
 0x29d   : > { %1559 = vpow2.f32 %v789_v55  ;;  %v378_v55 = vsel %vm365_vm2, %v2084_v6, 0.0 }
 0x29e   : > { %1561 = vpow2.f32 %v791_v56 }
 0x2a3   : > { %v2174_v58 = vpop.eup %1559 }
 0x2a4   : > { %v793_v50 = vsel %vm365_vm2, %v2174_v58, 0.0 }
 0x2b0   : > { %v1533_v59 = vpop.permute.xlu1 %1532 }
 0x2b1   : > { %v1534_v2 = vunpack.i.l.bf16 %v1533_v59  ;;  %v1535_v4 = vunpack.i.h.bf16 %v1533_v59 }
 0x2c4   : > { %v2129_v26 = vpop.f32.mrf.mxu3 }
 0x2cc   : > { %v2131_v27 = vpop.f32.mrf.mxu3 }
 0x2d4   : > { %v452_v28 = vpop.f32.mrf.mxu3 }
 0x2d5   : > { %v458_v29 = vsel %vm365_vm2, %v452_v28, -inf }
 0x2d6   : > { %459 = vmax.xlane.f32.xlu2 %v458_v29 }
 0x2dc   : > { %v455_v30 = vpop.f32.mrf.mxu3 }
 0x2dd   : > { %v461_v31 = vsel %vm365_vm2, %v455_v30, -inf }
 0x2de   : > { %462 = vmax.xlane.f32.xlu1 %v461_v31  ;;  %v381_v31 = vsel %vm365_vm2, %v2092_v8, 0.0 }
 0x2e3   : > { %v2135_v32 = vpop.f32.mrf.mxu0 }
 0x2e4   : > { %v668_v33 = vpop.f32.mrf.mxu3  ;;  %v995_v45 = vsel %vm365_vm2, %v2135_v32, -inf }
 0x2e5   : > { %v674_v34 = vsel %vm365_vm2, %v668_v33, -inf }
 0x2e6   : > { %675 = vmax.xlane.f32.xlu0 %v674_v34 }
 0x2eb   : > { %v2138_v35 = vpop.f32.mrf.mxu0 }
 0x2ec   : > { %v2140_v36 = vpop.f32.mrf.mxu3  ;;  %v998_v37 = vsel %vm365_vm2, %v2138_v35, -inf }
 0x2ed   : > { %v677_v38 = vsel %vm365_vm2, %v2140_v36, -inf }
 0x2ee   : > { %678 = vmax.xlane.f32.xlu1 %v677_v38  ;;  %999 = vmax.xlane.f32.xlu0 %v998_v37 }
 0x2f4   : > { %v2146_v39 = vpop.f32.mrf.mxu3 }
 0x2f5   : > { %v888_v40 = vsel %vm365_vm2, %v2146_v39, -inf }
 0x2f6   : > { %889 = vmax.xlane.f32.xlu1 %v888_v40 }
 0x2fc   : > { %v2150_v41 = vpop.f32.mrf.mxu3 }
 0x2fd   : > { %v891_v42 = vsel %vm365_vm2, %v2150_v41, -inf }
 0x2fe   : > { %892 = vmax.xlane.f32.xlu2 %v891_v42 }
 0x304   : > { %v2154_v44 = vpop.f32.mrf.mxu3 }
 0x305   : > { %v1102_v53 = vsel %vm365_vm2, %v2154_v44, -inf }
 0x306   : > { %996 = vmax.xlane.f32.xlu2 %v995_v45 }
 0x30c   : > { %v2158_v46 = vpop.f32.mrf.mxu3 }
 0x30d   : > { %v1105_v47 = vsel %vm365_vm2, %v2158_v46, -inf }
 0x30e   : > { %1106 = vmax.xlane.f32.xlu0 %v1105_v47 }
 0x30f   : > { %1537 = vrot.lane.b32.xlu1 %v2051_v43, %s1809_s6  ;;  %s1725_s6 = scalar_lea.hbm %s2298_s3, 32 }
 0x31e   : > { %1542 = vrot.lane.b32.xlu2 %v2051_v43, %s1811_s8 }
 0x322   : > { %1547 = vrot.lane.b32.xlu0 %v2051_v43, %s1813_s18  ;;  %v2176_v43 = vpop.eup %1561 }
 0x323   : > { %v796_v51 = vsel %vm365_vm2, %v2176_v43, 0.0 }
 0x339   : > { %1103 = vmax.xlane.f32.xlu1 %v1102_v53 }
 0x341   : > { %580 = vadd.xlane.f32.xlu1 %v579_v57 }
 0x349   : > { %v460_v60 = vpop.xlane.xlu2 %459  ;;  %794 = vadd.xlane.f32.xlu1 %v793_v50 }
 0x34a   : > { %v464_v61 = vsub.f32 %v452_v28, %v460_v60 }
 0x34c   : > { %v466_v62 = vmul.f32 1.442695, %v464_v61  ;;  %797 = vadd.xlane.f32.xlu0 %v796_v51  ;;  %v614_v61 = vpop.f32.mrf.mxu1 }
 0x34e   : > { %1563 = vpow2.f32 %v466_v62 }
 0x351   : > { %v463_v63 = vpop.xlane.xlu1 %462 }
 0x352   : > { %v465_v0 = vsub.f32 %v455_v30, %v463_v63 }
 0x354   : > { %v1564_v1 = vpop.eup %1563  ;;  %v468_v3 = vmul.f32 1.442695, %v465_v0 }
 0x355   : > { %1364 = vmatmul.msk.f32.vlgmr.msrb.gmra.mxu2 %vm365_vm2, %v1564_v1  ;;  %v470_v37 = vsel %vm365_vm2, %v1564_v1, 0.0 }
 0x356   : > { %1565 = vpow2.f32 %v468_v3  ;;  %932 = vmatpush.msrb.mxu2 %v1534_v2 }
 0x358   : > { %933 = vmatpush.msrb.mxu2 %v1535_v4 }
 0x359   : > { %v676_v5 = vpop.xlane.xlu0 %675 }
 0x35a   : > { %v680_v7 = vsub.f32 %v668_v33, %v676_v5 }
 0x35c   : > { %v1566_v9 = vpop.eup %1565  ;;  %v682_v10 = vmul.f32 1.442695, %v680_v7 }
 0x35d   : > { %1365 = vmatmul.msk.f32.gmra.mxu2 %vm365_vm2, %v1566_v9 }
 0x35e   : > { %1567 = vpow2.f32 %v682_v10 }
 0x361   : > { %v679_v11 = vpop.xlane.xlu1 %678  ;;  %v1000_v12 = vpop.xlane.xlu0 %999 }
 0x362   : > { %v681_v13 = vsub.f32 %v2140_v36, %v679_v11  ;;  %v1002_v14 = vsub.f32 %v2138_v35, %v1000_v12  ;;  %v617_v12 = vpop.f32.mrf.mxu1 }
 0x364   : > { %v2186_v15 = vpop.eup %1567  ;;  %v684_v16 = vmul.f32 1.442695, %v681_v13  ;;  %v1005_v17 = vmul.f32 1.442695, %v1002_v14 }
 0x365   : > { %1376 = vmatmul.msk.f32.vlgmr.msra.gmra.mxu2 %vm365_vm2, %v2186_v15 }
 0x366   : > { %1569 = vpow2.f32 %v684_v16 }
 0x367   : > { %1571 = vpow2.f32 %v1005_v17 }
 0x369   : > { %v890_v18 = vpop.xlane.xlu1 %889 }
 0x36a   : > { %v894_v19 = vsub.f32 %v2146_v39, %v890_v18 }
 0x36c   : > { %v1570_v20 = vpop.eup %1569  ;;  %v896_v21 = vmul.f32 1.442695, %v894_v19 }
 0x36d   : > { %v1572_v22 = vpop.eup %1571  ;;  %1377 = vmatmul.msk.f32.gmra.mxu2 %vm365_vm2, %v1570_v20  ;;  %v689_v52 = vsel %vm365_vm2, %v1570_v20, 0.0 }
 0x36e   : > { %1573 = vpow2.f32 %v896_v21  ;;  %v1010_v23 = vsel %vm365_vm2, %v1572_v22, 0.0 }
 0x36f   : > { %1011 = vadd.xlane.f32.xlu2 %v1010_v23 }
 0x371   : > { %v893_v24 = vpop.xlane.xlu2 %892 }
 0x372   : > { %v895_v28 = vsub.f32 %v2150_v41, %v893_v24 }
 0x374   : > { %v2194_v29 = vpop.eup %1573  ;;  %v898_v30 = vmul.f32 1.442695, %v895_v28 }
 0x375   : > { %1388 = vmatmul.msk.f32.vlgmr.msrb.gmra.mxu2 %vm365_vm2, %v2194_v29 }
 0x376   : > { %1575 = vpow2.f32 %v898_v30 }
 0x377   : > { %382 = vadd.xlane.f32.xlu2 %v381_v31 }
 0x379   : > { %v997_v33 = vpop.xlane.xlu2 %996 }
 0x37a   : > { %v1001_v34 = vsub.f32 %v2135_v32, %v997_v33  ;;  %v473_v32 = vsel %vm365_vm2, %v1566_v9, 0.0 }
 0x37c   : > { %v1576_v35 = vpop.eup %1575  ;;  %v1003_v36 = vmul.f32 1.442695, %v1001_v34  ;;  %v686_v34 = vsel %vm365_vm2, %v2186_v15, 0.0 }
 0x37d   : > { %1389 = vmatmul.msk.f32.gmra.mxu2 %vm365_vm2, %v1576_v35  ;;  %v903_v0 = vsel %vm365_vm2, %v1576_v35, 0.0 }
 0x37e   : > { %1577 = vpow2.f32 %v1003_v36 }
 0x37f   : > { %471 = vadd.xlane.f32.xlu2 %v470_v37 }
 0x381   : > { %v1538_v38 = vpop.permute.xlu1 %1537  ;;  %v1543_v39 = vpop.permute.xlu2 %1542 }
 0x382   : > { %v1539_v40 = vunpack.i.l.bf16 %v1538_v38  ;;  %v1544_v41 = vunpack.i.l.bf16 %v1543_v39  ;;  %v1540_v45 = vunpack.i.h.bf16 %v1538_v38  ;;  %v1545_v8 = vunpack.i.h.bf16 %v1543_v39  ;;  %v1107_v48 = vpop.xlane.xlu0 %1106 }
 0x383   : > { %v1109_v50 = vsub.f32 %v2158_v46, %v1107_v48  ;;  %v900_v46 = vsel %vm365_vm2, %v2194_v29, 0.0 }
 0x384   : > { %v1578_v42 = vpop.eup %1577  ;;  %825 = vmatpush.msrb.mxu1 %v1539_v40  ;;  %1146 = vmatpush.msra.mxu2 %v1544_v41 }
 0x385   : > { %v1007_v47 = vsel %vm365_vm2, %v1578_v42, 0.0  ;;  %v1112_v59 = vmul.f32 1.442695, %v1109_v50 }
 0x386   : > { %1008 = vadd.xlane.f32.xlu1 %v1007_v47  ;;  %826 = vmatpush.msrb.mxu1 %v1540_v45 }
 0x387   : > { %474 = vadd.xlane.f32.xlu2 %v473_v32  ;;  %1147 = vmatpush.msra.mxu2 %v1545_v8 }
 0x388   : > { %1382 = vmatmul.msk.f32.vlgmr.msrb.gmra.mxu1 %vm365_vm2, %v2174_v58 }
 0x38e   : > { %583 = vadd.xlane.f32.xlu1 %v582_v49 }
 0x38f   : > { %690 = vadd.xlane.f32.xlu2 %v689_v52 }
 0x390   : > { %1383 = vmatmul.msk.f32.gmra.mxu1 %vm365_vm2, %v2176_v43 }
 0x394   : > { %v1548_v53 = vpop.permute.xlu0 %1547 }
 0x395   : > { %v1549_v54 = vunpack.i.l.bf16 %v1548_v53  ;;  %v1550_v56 = vunpack.i.h.bf16 %v1548_v53 }
 0x396   : > { %379 = vadd.xlane.f32.xlu1 %v378_v55 }
 0x397   : > { %1039 = vmatpush.msra.mxu1 %v1549_v54 }
 0x399   : > { %1040 = vmatpush.msra.mxu1 %v1550_v56 }
 0x39a   : > { %1394 = vmatmul.msk.f32.vlgmr.msra.gmra.mxu1 %vm365_vm2, %v1578_v42 }
 0x3a2   : > { %1395 = vmatmul.msk.f32.gmra.mxu1 %vm365_vm2, %v1572_v22 }
 0x3ac   : > { %v1104_v25 = vpop.xlane.xlu1 %1103 }
 0x3ad   : > { %v1108_v57 = vsub.f32 %v2154_v44, %v1104_v25 }
 0x3af   : > { %v1110_v58 = vmul.f32 1.442695, %v1108_v57 }
 0x3b1   : > { %1579 = vpow2.f32 %v1110_v58 }
 0x3b4   : > { %v581_v43 = vpop.xlane.xlu1 %580 }
 0x3b5   : > { %1581 = vrcp.f32 %v581_v43 }
 0x3b6   : > { %1583 = vpow2.f32 %v1112_v59 }
 0x3b7   : > { %v1580_v60 = vpop.eup %1579 }
 0x3b8   : > { %1400 = vmatmul.msk.f32.vlgmr.msra.gmra.mxu2 %vm365_vm2, %v1580_v60  ;;  %v1114_v5 = vsel %vm365_vm2, %v1580_v60, 0.0 }
 0x3bb   : > { %v1582_v6 = vpop.eup %1581 }
 0x3bc   : > { %v622_v51 = vmul.f32 %v1582_v6, %v614_v61  ;;  %v1584_v62 = vpop.eup %1583  ;;  %v795_v2 = vpop.xlane.xlu1 %794 }
 0x3bd   : > { %v1117_v35 = vsel %vm365_vm2, %v1584_v62, 0.0 }
 0x3be   : > { %626 = vrot.lane.b32.xlu1 %v622_v51, %s1812_s27 }
 0x3bf   : > { %v798_v39 = vpop.xlane.xlu0 %797 }
 0x3c0   : > { %1401 = vmatmul.msk.f32.gmra.mxu2 %vm365_vm2, %v1584_v62 }
 0x3d8   : > { %v507_v9 = vpop.f32.mrf.mxu2 }
 0x3e0   : > { %v510_v22 = vpop.f32.mrf.mxu2 }
 0x3e2   : > { %v2221_v44 = vpop.xlane.xlu2 %1011 }
 0x3e8   : > { %901 = vadd.xlane.f32.xlu1 %v900_v46  ;;  %v721_v36 = vpop.f32.mrf.mxu2 }
 0x3ea   : > { %v383_v63 = vpop.xlane.xlu2 %382 }
 0x3eb   : > { %1585 = vrcp.f32 %v383_v63 }
 0x3f0   : > { %904 = vadd.xlane.f32.xlu1 %v903_v0  ;;  %v724_v38 = vpop.f32.mrf.mxu2 }
 0x3f1   : > { %v1586_v1 = vpop.eup %1585 }
 0x3f2   : > { %v416_v3 = vmul.f32 %v1586_v1, %v2131_v27  ;;  %v472_v4 = vpop.xlane.xlu2 %471 }
 0x3f3   : > { %1587 = vrcp.f32 %v472_v4  ;;  %v1178_v4 = vld [vmem:[#allocation8 + $0x30] sm:$0xff] }
 0x3f4   : > { %418 = vst.msk [vmem:[#allocation2 + $0x8] sm:$0xff] %vm333_vm1, %v416_v3  ;;  %1589 = vrcp.f32 %v795_v2  ;;  %v1179_v3 = vld [vmem:[#allocation8 + $0x38] sm:$0xff] }
 0x3f5   : > { %1194 = vmatpush.msra.mxu0 %v1179_v3 }
 0x3f7   : > { %1195 = vmatpush.msra.mxu0 %v1178_v4 }
 0x3f8   : > { %1115 = vadd.xlane.f32.xlu1 %v1114_v5  ;;  %v935_v41 = vpop.f32.mrf.mxu2  ;;  %v1177_v5 = vld [vmem:[#allocation8 + $0x28] sm:$0xff] }
 0x3f9   : > { %v1588_v7 = vpop.eup %1587  ;;  %v1009_v10 = vpop.xlane.xlu1 %1008  ;;  %1196 = vmatpush.msra.mxu0 %v1177_v5 }
 0x3fa   : > { %v515_v11 = vmul.f32 %v1588_v7, %v507_v9  ;;  %v475_v14 = vpop.xlane.xlu2 %474  ;;  %v1590_v16 = vpop.eup %1589  ;;  %v1175_v7 = vld [vmem:[#allocation8 + $0x18] sm:$0xff]  ;;  %v1174_v9 = vld [vmem:[#allocation8 + $0x10] sm:$0xff] }
 0x400   : > { %v938_v32 = vpop.f32.mrf.mxu2 }
 0x401   : > { %v584_v13 = vpop.xlane.xlu1 %583 }
 0x402   : > { %1591 = vrcp.f32 %v584_v13  ;;  %v691_v56 = vpop.xlane.xlu2 %690 }
 0x403   : > { %1593 = vrcp.f32 %v475_v14 }
 0x405   : > { %v828_v17 = vpop.f32.mrf.mxu1 }
 0x406   : > { %v836_v27 = vmul.f32 %v1590_v16, %v828_v17 }
 0x408   : > { %v1592_v18 = vpop.eup %1591  ;;  %840 = vrot.lane.b32.xlu0 %v836_v27, %s1808_s5 }
 0x409   : > { %v380_v19 = vpop.xlane.xlu1 %379  ;;  %v623_v20 = vmul.f32 %v1592_v18, %v617_v12  ;;  %v1594_v21 = vpop.eup %1593 }
 0x40a   : > { %1595 = vrcp.f32 %v380_v19  ;;  %v516_v24 = vmul.f32 %v1594_v21, %v510_v22 }
 0x40b   : > { %1597 = vrcp.f32 %v1009_v10  ;;  %v1173_v10 = vld [vmem:[#allocation8 + $0x8] sm:$0xff] }
 0x40d   : > { %v831_v23 = vpop.f32.mrf.mxu1 }
 0x410   : > { %v1596_v28 = vpop.eup %1595 }
 0x411   : > { %v415_v29 = vmul.f32 %v1596_v28, %v2129_v26  ;;  %521 = vrot.lane.b32.xlu1 %v516_v24, %s1810_s7  ;;  %v1598_v30 = vpop.eup %1597 }
 0x413   : > { %417 = vst.msk [vmem:[#allocation2] sm:$0xff] %vm333_vm1, %v415_v29 }
 0x417   : > { %v1042_v31 = vpop.f32.mrf.mxu1 }
 0x418   : > { %v1050_v33 = vmul.f32 %v1598_v30, %v1042_v31 }
 0x41a   : > { %1054 = vrot.lane.b32.xlu0 %v1050_v33, %s1805_s29 }
 0x41f   : > { %v1045_v63 = vpop.f32.mrf.mxu1 }
 0x430   : > { %v627_v37 = vpop.permute.xlu1 %626 }
 0x43b   : > { %v1149_v25 = vpop.f32.mrf.mxu2 }
 0x443   : > { %v1152_v60 = vpop.f32.mrf.mxu2 }
 0x444   : > { %687 = vadd.xlane.f32.xlu0 %v686_v34 }
 0x44c   : > { %1118 = vadd.xlane.f32.xlu0 %v1117_v35 }
 0x45b   : > { %v902_v26 = vpop.xlane.xlu1 %901 }
 0x45c   : > { %1599 = vrcp.f32 %v902_v26 }
 0x45d   : > { %1601 = vrcp.f32 %v798_v39 }
 0x460   : > { %519 = vrot.lane.b32.xlu0 %v515_v11, %s1810_s7  ;;  %v1172_v11 = vld [vmem:[#allocation8] sm:$0xff] }
 0x462   : > { %v1600_v40 = vpop.eup %1599 }
 0x463   : > { %v905_v42 = vpop.xlane.xlu1 %904  ;;  %v943_v45 = vmul.f32 %v1600_v40, %v935_v41  ;;  %v1602_v15 = vpop.eup %1601 }
 0x464   : > { %1603 = vrcp.f32 %v905_v42  ;;  %v837_v47 = vmul.f32 %v1602_v15, %v831_v23 }
 0x465   : > { %947 = vrot.lane.b32.xlu1 %v943_v45, %s1806_s30 }
 0x468   : > { %628 = vrot.lane.b32.xlu0 %v623_v20, %s1812_s27 }
 0x46a   : > { %v1604_v8 = vpop.eup %1603 }
 0x46b   : > { %v944_v48 = vmul.f32 %v1604_v8, %v938_v32  ;;  %v1116_v49 = vpop.xlane.xlu1 %1115 }
 0x46d   : > { %842 = vrot.lane.b32.xlu1 %v837_v47, %s1808_s5 }
 0x470   : > { %949 = vrot.lane.b32.xlu0 %v944_v48, %s1806_s30  ;;  %s1212_s30 = scalar_lea.sflag [#allocation5], %s1937_s19 }
 0x47a   : > { %v841_v53 = vpop.permute.xlu0 %840 }
 0x483   : > { %v522_v52 = vpop.permute.xlu1 %521 }
 0x484   : > { %527 = vst.msk [vmem:[#allocation2 + $0x8] sm:$0xff] %vm525_vm3, %v522_v52 }
 0x48c   : > { %v1055_v54 = vpop.permute.xlu0 %1054 }
 0x4b7   : > { %v688_v55 = vpop.xlane.xlu0 %687 }
 0x4b8   : > { %1605 = vrcp.f32 %v688_v55 }
 0x4b9   : > { %1607 = vrcp.f32 %v691_v56 }
 0x4be   : > { %v1606_v57 = vpop.eup %1605 }
 0x4bf   : > { %v1119_v58 = vpop.xlane.xlu0 %1118  ;;  %v729_v50 = vmul.f32 %v1606_v57, %v721_v36  ;;  %v1608_v43 = vpop.eup %1607 }
 0x4c0   : > { %1609 = vrcp.f32 %v1119_v58  ;;  %v730_v6 = vmul.f32 %v1608_v43, %v724_v38 }
 0x4c1   : > { %733 = vrot.lane.b32.xlu2 %v729_v50, %s1807_s4  ;;  %1611 = vrcp.f32 %v1116_v49 }
 0x4c2   : > { %1613 = vrcp.f32 %v2221_v44  ;;  %v1176_v44 = vld [vmem:[#allocation8 + $0x20] sm:$0xff] }
 0x4c3   : > { %1197 = vmatpush.msra.mxu0 %v1176_v44 }
 0x4c5   : > { %1198 = vmatpush.msra.mxu0 %v1175_v7 }
 0x4c6   : > { %v1610_v59 = vpop.eup %1609 }
 0x4c7   : > { %v1158_v61 = vmul.f32 %v1610_v59, %v1152_v60  ;;  %v1612_v51 = vpop.eup %1611  ;;  %1199 = vmatpush.msra.mxu0 %v1174_v9 }
 0x4c8   : > { %v1157_v62 = vmul.f32 %v1612_v51, %v1149_v25  ;;  %v1614_v0 = vpop.eup %1613 }
 0x4c9   : > { %735 = vrot.lane.b32.xlu2 %v730_v6, %s1807_s4  ;;  %1163 = vrot.lane.b32.xlu1 %v1158_v61, %s1800_s21  ;;  %v1051_v1 = vmul.f32 %v1614_v0, %v1045_v63 }
 0x4ca   : > { %1200 = vmatpush.msra.mxu0 %v1173_v10 }
 0x4cc   : > { %1201 = vmatpush.msra.mxu0 %v1172_v11 }
 0x4d1   : > { %1161 = vrot.lane.b32.xlu2 %v1157_v62, %s1800_s21  ;;  %s1410_s21 = sshll.u32 %s1783_s15, 4 }
 0x4d2   : > { %v520_v46 = vpop.permute.xlu0 %519  ;;  %s1225_s10 = scalar_lea.hbm %s2298_s3, %s1410_s21 }
 0x4d3   : > { %526 = vst.msk [vmem:[#allocation2] sm:$0xff] %vm525_vm3, %v520_v46 }
 0x4d4   : > { %633 = vst.msk [vmem:[#allocation2] sm:$0xff] %vm632_vm4, %v627_v37 }
 0x4d7   : > { %v948_v12 = vpop.permute.xlu1 %947 }
 0x4d9   : > { %1056 = vrot.lane.b32.xlu2 %v1051_v1, %s1805_s29  ;;  %s1228_s29 = sshll.u32 %s1225_s10, 4  ;;  %s1229_s29 = int_to_ptr.hbm [resolvable:$true] %s1228_s29 }
 0x4da   : > { %v629_v2 = vpop.permute.xlu0 %628  ;;  %s1719_s4 = sshra.s32 %s1229_s29, 4  ;;  %s1720_s4 = int_to_ptr.hbm [resolvable:$true] %s1719_s4 }
 0x4db   : > { %634 = vst.msk [vmem:[#allocation2 + $0x8] sm:$0xff] %vm632_vm4, %v629_v2  ;;  %s1721_s5 = scalar_lea.hbm %s1720_s4, 16  ;;  %p1726_p11 = scmp.lt.s32.totalorder %s1720_s4, %s2298_s3 }
 0x4dc   : > { %p1722_p1 = scmp.ne.s32.totalorder %s1720_s4, %s1721_s5  ;;  %p1727_p12 = scmp.lt.s32.totalorder %s1725_s6, %s1721_s5 }
 0x4de   : > { %p1723_p3 = pnand %p1722_p1, %p1914_p2  ;;  %p1728_p13 = por %p1727_p12, %p1726_p11 }
 0x4df   : > { %v843_v16 = vpop.permute.xlu1 %842 }
 0x4e0   : > { %p1724_p7 = pneg %p1723_p3 }
 0x4e2   : > { %v950_v17 = vpop.permute.xlu0 %949  ;;  %p1729_p0 = pnand %p1728_p13, %p1724_p7 }
 0x51b   : > { %v734_v13 = vpop.permute.xlu2 %733 }
 0x51c   : > { %740 = vst.msk [vmem:[#allocation2] sm:$0xff] %vm739_vm5, %v734_v13 }
 0x51d   : > { %847 = vst.msk [vmem:[#allocation2] sm:$0xff] %vm846_vm6, %v841_v53 }
 0x51e   : > { %954 = vst.msk [vmem:[#allocation2] sm:$0xff] %vm953_vm7, %v948_v12 }
 0x51f   : > { %1061 = vst.msk [vmem:[#allocation2] sm:$0xff] %vm1060_vm8, %v1055_v54 }
 0x523   : > { %v736_v14 = vpop.permute.xlu2 %735 }
 0x524   : > { %741 = vst.msk [vmem:[#allocation2 + $0x8] sm:$0xff] %vm739_vm5, %v736_v14 }
 0x525   : > { %848 = vst.msk [vmem:[#allocation2 + $0x8] sm:$0xff] %vm846_vm6, %v843_v16 }
 0x526   : > { %955 = vst.msk [vmem:[#allocation2 + $0x8] sm:$0xff] %vm953_vm7, %v950_v17 }
 0x52b   : > { %v1162_v27 = vpop.permute.xlu2 %1161 }
 0x52c   : > { %1168 = vst.msk [vmem:[#allocation2] sm:$0xff] %vm1167_vm9, %v1162_v27 }
 0x533   : > { %v1057_v18 = vpop.permute.xlu2 %1056  ;;  %v1170_v19 = vld [vmem:[#allocation2] sm:$0xff] }
 0x534   : > { %1062 = vst.msk [vmem:[#allocation2 + $0x8] sm:$0xff] %vm1060_vm8, %v1057_v18  ;;  %1402 = vmatmul.msk.f32.vlgmr.msra.gmra.mxu0 %vm274_vm0, %v1170_v19 }
 0x53b   : > { %v1164_v20 = vpop.permute.xlu1 %1163 }
 0x53c   : > { %1169 = vst.msk [vmem:[#allocation2 + $0x8] sm:$0xff] %vm1167_vm9, %v1164_v20 }
 0x543   : > { %v1171_v21 = vld [vmem:[#allocation2 + $0x8] sm:$0xff] }
 0x544   : > { %1403 = vmatmul.msk.f32.gmra.mxu0 %vm274_vm0, %v1171_v21 }
 0x5b1   : > { %v1203_v22 = vpop.f32.mrf.mxu0 }
 0x5b2   : > { %1209 = vst.msk [vmem:[%s253_s20] sm:$0xff] %vm274_vm0, %v1203_v22 }
 0x5c1   : > { %v1206_v23 = vpop.f32.mrf.mxu0 }
 0x5c2   : > { %1210 = vst.msk [vmem:[%s253_s20 + $0x8] sm:$0xff] %vm274_vm0, %v1206_v23 }
 0x5c3   : > { %1732 = shalt.err (!%p1729_p0)
}
 0x5c4   : > { %s1814_s19 = smov 128  }
 0x5c5   : > { %1423 = dma.vmem_to_hbm [thread:$0]  (%p1914_p2), %s1227_s25, 256, %s1229_s29, %s1212_s30, %s1814_s19, %s1814_s19, %s1810_s7  }
 0x5c6 PF: > { %s1243_s18 = sand.u32 1, %s1771_s12   ;;  %p1437_p4 = pnand %p1341_p10, %p1882_p5 }
 0x5c7   : > { %s1244_s20 = scalar_lea.sflag [#allocation5], %s1243_s18 }
 0x5c8   : > { %p1438_p6 = pneg %p1437_p4 }
 0x5ca   : > { %1766 = dma.done.wait (%p1438_p6), %s1244_s20, 256  }
 0x5cb   : > { %1768 = vsyncadd (%p1438_p6), %s1244_s20, 4294967040  ;;  %s20_s17 = sadd.s32 1, %s1791_s17   ;;  %s2304_s12 = smov %s1775_s13 }
 0x5cc   : > { %p17_p8 = scmp.ge.s32.totalorder %s20_s17, 4   ;;  %s2305_s13 = smov %s1779_s14 }
 0x5cd   : > { %s2306_s14 = smov %s1924_s28  ;;  %s2307_s15 = smov %s1787_s16 }
 0x5ce   : > { %s2308_s16 = smov %s2310_s11  ;;  %19 = sbr.rel (!%p17_p8) target bundleno = 7 (0x7), region = 87 }
 0x5d3   :  { %1250 = vsyncpa [#allocation4], 1 }
 0x5d4   :  { %1252 = vsyncpa [#allocation4 + $0x1], 1 }
 0x5d5   :  { %1253 = vsyncpa [#allocation7], 1 }
 0x5d6   :  { %1254 = vsyncpa [#allocation5], 1 }
 0x5d7   :  { %1256 = vsyncpa [#allocation5 + $0x1], 1 }

</bundles_post_ra>
